<compile_context>
chip_gen: v5e
topology: v5e:2x2
jax: 0.10.0
libtpu: 0.0.40
codegen_flags: <defaults>
</compile_context>

<pallas_src>
import jax
import jax.numpy as jnp
from jax.experimental import pallas as pl
from jax.experimental.pallas import tpu as pltpu


# ---------------------------------------------------------------------------
# Kernel
# ---------------------------------------------------------------------------
def _mask_observed_kernel(pred_ref, obs_ref, out_ref):
    """out = pred where not observed, -1e8 where observed (elementwise)."""
    p = pred_ref[...]
    o = obs_ref[...]
    if o.dtype == jnp.bool_:
        observed = o
    else:
        if o.dtype.itemsize < 4:
            # Widen packed dtypes (int8 / bf16) before the compare.
            o = o.astype(jnp.float32)
        observed = o != 0
    out_ref[...] = jnp.where(observed, -1.0e8, p).astype(out_ref.dtype)


# ---------------------------------------------------------------------------
# Tiling helpers
# ---------------------------------------------------------------------------
def _round_up(x: int, m: int) -> int:
    return ((x + m - 1) // m) * m


def _sublane_granularity(dtype) -> int:
    """Minimum legal sublane (second-to-last) block multiple for a dtype."""
    bits = jnp.dtype(dtype).itemsize * 8
    return max(8, 256 // bits)  # f32 -> 8, bf16 -> 16, int8/bool -> 32


def _vmem_capacity_bytes() -> int:
    try:
        return int(pltpu.get_tpu_info().vmem_capacity_bytes)
    except Exception:
        return 64 * 1024 * 1024  # conservative default (v7x per-TensorCore VMEM)


def _lane_dense_shape(b: int, n: int):
    """For tiny batches find an equivalent (rows, cols) view with >=8 rows and
    a lane-aligned last dim.  The op is elementwise, so this relayout is free
    wrapper-side plumbing that restores full vreg occupancy."""
    total = b * n
    for cols in (4096, 2048, 1024, 512, 256, 128):
        if total % cols == 0 and total // cols >= 8:
            return total // cols, cols
    return None


def _select_tiles(b, n, per_elem_bytes, sub_g, budget_bytes):
    """Largest (batch_tile, item_tile) whose double-buffered footprint fits."""
    it = n if n < 128 else min(_round_up(n, 128), 2048)
    bt = b if b < sub_g else min(_round_up(b, sub_g), 512)

    def live_bytes(bt_, it_):
        # 2 inputs + 1 output, each double-buffered by the Pallas pipeline.
        return 2 * bt_ * it_ * per_elem_bytes

    while live_bytes(bt, it) > budget_bytes:
        if b >= sub_g and bt > sub_g:
            # Shrink batch tile first -- lane width is what matters for DMA/vst.
            bt = max(sub_g, _round_up(bt // 2, sub_g))
        elif n >= 128 and it > 128:
            it = max(128, _round_up(it // 2, 128))
        else:
            break
    return bt, it


# ---------------------------------------------------------------------------
# Wrapper
# ---------------------------------------------------------------------------
def mask_observed(pred_score: jax.Array,
                  observed_inter: jax.Array,
                  *,
                  batch_tile: int | None = None,
                  item_tile: int | None = None,
                  min_pallas_elements: int = 1 << 15,
                  donate_pred_score: bool = False) -> jax.Array:
    """Pallas implementation of AllRankRec.mask_observed.

    pred_score:     (batch_size, num_items) float scores.
    observed_inter: (batch_size, num_items) binary mask.  int8 / bool is
                    preferred (cuts HBM traffic ~25% vs an f32 0/1 mask);
                    any dtype works -- nonzero entries are masked to -1e8.
    """
    assert pred_score.shape == observed_inter.shape
    assert pred_score.ndim == 2
    b, n = pred_score.shape

    # Tiny inputs: pallas_call launch / per-step overhead dwarfs the work;
    # let XLA fuse the elementwise op instead.
    if b * n < min_pallas_elements:
        return jnp.where(observed_inter != 0, -1.0e8,
                         pred_score).astype(pred_score.dtype)

    # Lane-dense relayout for tiny batches (avoid wasting 6/8 sublanes).
    orig_shape = (b, n)
    reshaped = False
    if b < 8:
        alt = _lane_dense_shape(b, n)
        if alt is not None:
            pred_score = pred_score.reshape(alt)
            observed_inter = observed_inter.reshape(alt)
            b, n = alt
            reshaped = True

    per_elem = 2 * pred_score.dtype.itemsize + observed_inter.dtype.itemsize
    sub_g = max(_sublane_granularity(pred_score.dtype),
                _sublane_granularity(observed_inter.dtype))

    # Generation-aware VMEM budget (v5e/v6e: 128 MiB, v7x: 64 MiB per TC).
    vmem_cap = _vmem_capacity_bytes()
    vmem_limit = vmem_cap // 2           # 64 MiB on v5e/v6e, 32 MiB on v7x
    budget = (vmem_limit * 2) // 3       # headroom for pipeline bookkeeping

    bt, it = _select_tiles(b, n, per_elem, sub_g, budget)
    if batch_tile is not None:
        bt = batch_tile
    if item_tile is not None:
        it = item_tile

    grid = (pl.cdiv(b, bt), pl.cdiv(n, it))
    blk = pl.BlockSpec((bt, it), lambda i, j: (i, j))

    out = pl.pallas_call(
        _mask_observed_kernel,
        out_shape=jax.ShapeDtypeStruct((b, n), pred_score.dtype),
        grid_spec=pltpu.PrefetchScalarGridSpec(
            num_scalar_prefetch=0,
            grid=grid,
            in_specs=[blk, blk],
            out_specs=blk,
        ),
        compiler_params=pltpu.CompilerParams(
            dimension_semantics=("parallel", "parallel"),
            vmem_limit_bytes=vmem_limit,
        ),
        # Optionally write the masked scores in place over pred_score.
        input_output_aliases=({0: 0} if donate_pred_score else {}),
    )(pred_score, observed_inter)

    if reshaped:
        out = out.reshape(orig_shape)
    return out


# ---------------------------------------------------------------------------
# Module
# ---------------------------------------------------------------------------
class AllRankRec:
    """JAX/Pallas port of the PyTorch AllRankRec base module (no parameters)."""

    def forward(self, observed_inter):
        # TODO(synk): forward() is abstract (`pass`) in the reference module;
        # a concrete subclass supplies pred_score (ideally fusing the masking
        # into its scoring kernel's epilogue).  Kept as a stand-in here.
        return None

    def mask_observed(self, pred_score, observed_inter, **kwargs):
        return mask_observed(pred_score, observed_inter, **kwargs)

    def full_predict(self, observed_inter, pred_score=None, **kwargs):
        if pred_score is None:
            pred_score = self.forward(observed_inter)
        return self.mask_observed(pred_score, observed_inter, **kwargs)


# ---------------------------------------------------------------------------
# Demo / correctness check
# ---------------------------------------------------------------------------
if __name__ == "__main__":
    model = AllRankRec()

    def run_case(key, batch_size, num_items):
        k_score, k_obs = jax.random.split(key)
        pred = jax.random.normal(k_score, (batch_size, num_items), jnp.float32)
        # Binary observed-interaction matrix (int8 mask -> less HBM traffic).
        obs = (jax.random.uniform(k_obs, (batch_size, num_items))
               < 0.2).astype(jnp.int8)

        # min_pallas_elements=0 forces the Pallas path at these demo shapes.
        out = model.full_predict(obs, pred_score=pred, min_pallas_elements=0)
        out = jax.block_until_ready(out)

        obs_f = obs.astype(jnp.float32)
        ref = pred * (1.0 - obs_f) - 1.0e8 * obs_f
        assert out.shape == (batch_size, num_items)
        assert jnp.allclose(out, ref, rtol=1e-6, atol=1e-6)

    key = jax.random.PRNGKey(0)
    k1, k2 = jax.random.split(key)

    # Tiny batch -> lane-dense reshape path ((2, 512) viewed as an (8, 128) slab).
    run_case(k1, 2, 512)
    # Non-tile-multiple shapes -> cdiv grid with masked partial tail blocks.
    run_case(k2, 12, 300)

    print("KERNEL_OK")
</pallas_src>

<mosaic_0001>
module attributes {stable_mosaic.version = 11 : i64} {
  func.func @_mask_observed_kernel(%arg0: i32, %arg1: i32, %arg2: memref<8x128xf32, #tpu.memory_space<vmem>>, %arg3: memref<8x128xi8, #tpu.memory_space<vmem>>, %arg4: memref<8x128xf32, #tpu.memory_space<vmem>>) attributes {dimension_semantics = [#tpu.dimension_semantics<parallel>, #tpu.dimension_semantics<parallel>], iteration_bounds = array<i64: 1, 1>, scalar_prefetch = 0 : i64, scratch_operands = 0 : i64, tpu.core_type = #tpu.core_type<tc>, window_params = [{transform_indices = @transform_0, window_bounds = array<i64: 8, 128>}, {transform_indices = @transform_1, window_bounds = array<i64: 8, 128>}, {transform_indices = @transform_2, window_bounds = array<i64: 8, 128>}]} {
    %c0 = arith.constant 0 : index
    %c0_0 = arith.constant 0 : index
    %0 = vector.load %arg2[%c0, %c0_0] : memref<8x128xf32, #tpu.memory_space<vmem>>, vector<8x128xf32>
    %c0_1 = arith.constant 0 : index
    %c0_2 = arith.constant 0 : index
    %1 = vector.load %arg3[%c0_1, %c0_2] : memref<8x128xi8, #tpu.memory_space<vmem>>, vector<8x128xi8>
    %2 = arith.sitofp %1 : vector<8x128xi8> to vector<8x128xf32>
    %cst = arith.constant 0.000000e+00 : f32
    %3 = vector.broadcast %cst : f32 to vector<8x128xf32>
    %4 = arith.cmpf one, %2, %3 : vector<8x128xf32>
    %cst_3 = arith.constant -1.000000e+08 : f32
    %5 = vector.broadcast %cst_3 : f32 to vector<8x128xf32>
    %6 = arith.select %4, %5, %0 : vector<8x128xi1>, vector<8x128xf32>
    %c0_4 = arith.constant 0 : index
    %c0_5 = arith.constant 0 : index
    %7 = vector.load %arg4[%c0_4, %c0_5] : memref<8x128xf32, #tpu.memory_space<vmem>>, vector<8x128xf32>
    tpu.vector_store %arg4[%c0_4, %c0_5], %6 {strides = array<i32>} : memref<8x128xf32, #tpu.memory_space<vmem>>, vector<8x128xf32>,
    return
  }
  func.func @transform_0(%arg0: i32, %arg1: i32) -> (i32, i32) {
    %c0_i32 = arith.constant 0 : i32
    return %arg0, %arg1 : i32, i32
  }
  func.func @transform_1(%arg0: i32, %arg1: i32) -> (i32, i32) {
    %c0_i32 = arith.constant 0 : i32
    return %arg0, %arg1 : i32, i32
  }
  func.func @transform_2(%arg0: i32, %arg1: i32) -> (i32, i32) {
    %c0_i32 = arith.constant 0 : i32
    return %arg0, %arg1 : i32, i32
  }
}

</mosaic_0001>

<bundles_post_ra>
// kernel: tpu_custom_call.1
= control target key start
LH: loop header
LB: loop body
LE: loop exit
PB: predicated region body
PF: predicated region fallthrough
CT: control target
= control target key end

     0   :  { %7 = vsyncpa [#allocation3], 0  ;;  %s173_s0 = inlined_call_operand.hbm [shape: f32[8,128], index: 0, kind: input, shape index: {}]   ;;  %s174_s1 = inlined_call_operand.hbm [shape: s8[8,128], index: 1, kind: input, shape index: {}]   ;;  %s175_s2 = inlined_call_operand.hbm [shape: f32[8,128], index: 2, kind: output, shape index: {}]  }
   0x1   :  { %8 = vsyncpa [#allocation6], 0 }
   0x2   :  { %9 = vsyncpa [#allocation4], 0  ;;  %s15_s11 = sshll.u32 %s173_s0, 4  ;;  %s146_s12 = smov [#allocation2]   ;;  %s16_s11 = int_to_ptr.hbm [resolvable:$true] %s15_s11 }
   0x3   :  { %s17_s13 = sshll.u32 %s146_s12, 4  ;;  %s26_s16 = sshll.u32 %s174_s1, 4  ;;  %s18_s13 = int_to_ptr.vmem [resolvable:$true] %s17_s13  ;;  %s27_s16 = int_to_ptr.hbm [resolvable:$true] %s26_s16 }
   0x4   :  { %20 = dma.hbm_to_vmem [thread:$0]  %s16_s11, 128, %s18_s13, [#allocation3]  }
   0x5   :  { %s147_s17 = smov [#allocation5]  }
   0x6   :  { %s28_s18 = sshll.u32 %s147_s17, 4  ;;  %s29_s18 = int_to_ptr.vmem [resolvable:$true] %s28_s18 }
   0x7   :  { %31 = dma.hbm_to_vmem [thread:$0]  %s27_s16, 32, %s29_s18, [#allocation6]  }
   0x8   :  { %140 = dma.done.wait [#allocation3], 128  }
   0x9   :  { %141 = vsyncadd [#allocation3], 4294967168 }
   0xa   :  { %142 = dma.done.wait [#allocation6], 32  }
   0xb   :  { %143 = vsyncadd [#allocation6], 4294967264  ;;  %v41_v0 = vld [vmem:[#allocation5] sm:$0x3]  ;;  %s148_s0 = smov [#allocation7]   ;;  %s54_s22 = sshll.u32 %s175_s2, 4  ;;  %s55_s22 = int_to_ptr.hbm [resolvable:$true] %s54_s22 }
   0xc   :  { %v42_v1 = vunpack.c.0.s8 %v41_v0  ;;  %s52_s19 = sshll.u32 %s148_s0, 4  ;;  %v40_v2 = vld [vmem:[#allocation2] sm:$0xff]  ;;  %s53_s19 = int_to_ptr.vmem [resolvable:$true] %s52_s19 }
   0xe   :  { %v43_v3 = vcvt.s32.f32 %v42_v1 }
  0x10   :  { %vm44_vm0 = vcmp.ne.f32.partialorder %v43_v3, 0.0 }
  0x11   :  { %v45_v4 = vsel %vm44_vm0, -1e+08, %v40_v2 }
  0x12   :  { %46 = vst [vmem:[#allocation7] sm:$0xff] %v45_v4 }
  0x13   :  { %57 = dma.vmem_to_hbm [thread:$0]  %s53_s19, 128, %s55_s22, [#allocation4]  }
  0x14   :  { %144 = dma.done.wait [#allocation4], 128  }
  0x15   :  { %145 = vsyncadd [#allocation4], 4294967168 }
  0x16   :  { %62 = vsyncpa [#allocation3], 1 }
  0x17   :  { %63 = vsyncpa [#allocation6], 1 }
  0x18   :  { %64 = vsyncpa [#allocation4], 1 }

</bundles_post_ra>
